<compile_context>
chip_gen: v6e
topology: v6e:2x2x1
jax: 0.10.0
libtpu: 0.0.40
codegen_flags: <defaults>
</compile_context>

<pallas_src>
import numpy as np
import jax
import jax.numpy as jnp
from jax import lax
from jax.experimental import pallas as pl
from jax.experimental.pallas import tpu as pltpu


def make_kernel(k):
    """numpy equivalent of the PyTorch make_kernel (static at construction time)."""
    k = np.asarray(k, dtype=np.float64)
    if k.ndim == 1:
        k = np.outer(k, k)
    k = k / k.sum()
    return k


def _build_downfir_mats(k2d, factor, pad0, pad1, H, W):
    """Banded matrices folding zero-pad + FIR + decimate for each spatial axis.

    out[oh, ow] = sum_r (A_r @ X @ B_r)[oh, ow]
                = sum_{i,j} flip(k2d)[i, j] * x_padded[oh*factor + i, ow*factor + j]
    """
    cf = np.asarray(k2d, dtype=np.float64)[::-1, ::-1]  # conv2d == corr with flipped k
    kh, kw = cf.shape
    out_h = (H + pad0 + pad1 - kh) // factor + 1
    out_w = (W + pad0 + pad1 - kw) // factor + 1

    # Separable (SVD) decomposition; rank 1 for the usual outer-product FIRs.
    u, s, vt = np.linalg.svd(cf)
    if s.size and s[0] > 0:
        keep = [r for r in range(s.size) if s[r] > s[0] * 1e-6]
    else:
        keep = [0]
    R = len(keep)

    A = np.zeros((R, out_h, H), dtype=np.float32)
    B = np.zeros((R, W, out_w), dtype=np.float32)
    for idx, r in enumerate(keep):
        a = u[:, r] * s[r]  # H-direction taps
        b = vt[r, :]        # W-direction taps
        for oh in range(out_h):
            for i in range(kh):
                h = oh * factor + i - pad0
                if 0 <= h < H:
                    A[idx, oh, h] = a[i]
        for ow in range(out_w):
            for j in range(kw):
                w = ow * factor + j - pad0
                if 0 <= w < W:
                    B[idx, w, ow] = b[j]
    return A, B, out_h, out_w


def _downsample_kernel(x_ref, a_ref, b_ref, o_ref):
    # x_ref: (TP, H, W)        block of input planes
    # a_ref: (R, out_h, H)     resident H-direction band matrices
    # b_ref: (R, W, out_w)     resident W-direction band matrices
    # o_ref: (TP, out_h, out_w)
    TP, H, W = x_ref.shape
    R, out_h, _ = a_ref.shape
    out_w = b_ref.shape[-1]

    # No dtype upcast of the block (bf16 stays bf16); f32 accumulation comes from
    # preferred_element_type.  DEFAULT MXU precision (a blur FIR does not need HIGHEST).
    x2 = x_ref[...].reshape(TP * H, W)
    acc = jnp.zeros((TP, out_h, out_w), dtype=jnp.float32)
    for r in range(R):  # static; R == 1 for separable (outer-product) FIRs
        # W-direction FIR + decimate: one flattened lane-dense MXU matmul, M = TP*H,
        # no broadcast copy of B.
        y = jnp.dot(x2, b_ref[r], preferred_element_type=jnp.float32)
        y = y.astype(x2.dtype).reshape(TP, H, out_w)
        # H-direction FIR + decimate: batched matmul; the broadcast of A_r over the
        # TP planes is accounted for in the wrapper's VMEM/TP budget.
        a = jnp.broadcast_to(a_ref[r][None], (TP, out_h, H))
        acc = acc + lax.dot_general(
            a, y,
            dimension_numbers=(((2,), (1,)), ((0,), (0,))),
            preferred_element_type=jnp.float32)
    o_ref[...] = acc.astype(o_ref.dtype)


def _vmem_limits():
    """Generation-aware VMEM numbers: (physical, scoped limit, block budget)."""
    try:
        info = pltpu.get_tpu_info()
        vmem_phys = int(getattr(info, "vmem_capacity_bytes", 0)) or (64 << 20)
    except Exception:
        vmem_phys = 64 << 20  # conservative default: v7x per-TensorCore VMEM
    # ~64 MiB on v5e/v6e (128 MiB physical), ~32 MiB on v7x (64 MiB per TC).
    vmem_limit = int(min(max(32 << 20, vmem_phys // 2), 96 << 20))
    block_budget = int(vmem_limit * 0.7)
    return vmem_phys, vmem_limit, block_budget


def downsample(x, kernel, factor=2):
    """Pallas TPU equivalent of Downsample(kernel, factor).forward(x). x: (N, C, H, W)."""
    N, C, H, W = x.shape
    k2d = make_kernel(kernel)
    p = k2d.shape[0] - factor
    pad0, pad1 = (p + 1) // 2, p // 2

    A_np, B_np, out_h, out_w = _build_downfir_mats(k2d, factor, pad0, pad1, H, W)
    R = A_np.shape[0]
    # FIR taps in the input dtype (exact in bf16 for the usual power-of-two FIRs such
    # as [1,3,3,1]/64); accumulation stays f32 via preferred_element_type.
    A = jnp.asarray(A_np, dtype=x.dtype)
    B = jnp.asarray(B_np, dtype=x.dtype)

    P = N * C
    xp = x.reshape(P, H, W)  # free reinterpretation of contiguous NCHW
    itemsize = np.dtype(x.dtype).itemsize

    vmem_phys, vmem_limit, budget = _vmem_limits()
    # Per-plane VMEM bytes per grid step (everything proportional to TP):
    #   double-buffered x/out blocks + f32 y/acc temporaries + broadcast copy of A_r
    #   + margin for a possible relayout copy of the flattened x block.
    per_plane = (
        itemsize * (2 * H * W + 2 * out_h * out_w)
        + 4 * (H * out_w + out_h * out_w)
        + itemsize * R * out_h * H
        + itemsize * H * W
    )
    fixed = 2 * itemsize * R * (out_h * H + W * out_w)  # resident A/B (<= 2 buffers)
    tp_cap = max(1, min(P, (budget - fixed) // max(1, per_plane)))
    if P >= 2:
        tp_cap = min(tp_cap, (P + 1) // 2)  # >= 2 grid steps: lets v7x use both TCs
    tp_cap = int(max(1, tp_cap))

    # Prefer an exact divisor of P near the cap (no padding); if N*C is awkward
    # (e.g. prime), pad P up to a multiple of TP instead of collapsing to TP=1.
    best_div = max(d for d in range(1, tp_cap + 1) if P % d == 0)
    if 2 * best_div >= tp_cap:
        TP, Ppad, xpp = best_div, P, xp
    else:
        TP = tp_cap
        Ppad = ((P + TP - 1) // TP) * TP
        xpp = jnp.pad(xp, ((0, Ppad - P), (0, 0), (0, 0)))
    grid = Ppad // TP

    # Make sure the scoped limit covers the chosen block even when TP was clamped to 1.
    need = fixed + per_plane * TP + (4 << 20)
    vmem_limit = int(min(max(vmem_limit, need), int(vmem_phys * 0.9)))

    # TODO(synk): halo'd H/W tiling if a single (H, W) plane ever exceeds the budget.
    # TODO(synk): lane-pack G=128//out_w planes (block-diagonal B) when out_w < 128 to
    #             avoid masked stores / underfilled MXU lanes at very small spatial sizes.

    def _call(single_buffer_consts):
        const_kw = {"pipeline_mode": pl.Buffered(1)} if single_buffer_consts else {}
        return pl.pallas_call(
            _downsample_kernel,
            out_shape=jax.ShapeDtypeStruct((Ppad, out_h, out_w), x.dtype),
            grid_spec=pltpu.PrefetchScalarGridSpec(
                num_scalar_prefetch=0,
                grid=(grid,),
                in_specs=[
                    pl.BlockSpec((TP, H, W), lambda i: (i, 0, 0)),
                    pl.BlockSpec((R, out_h, H), lambda i: (0, 0, 0), **const_kw),
                    pl.BlockSpec((R, W, out_w), lambda i: (0, 0, 0), **const_kw),
                ],
                out_specs=pl.BlockSpec((TP, out_h, out_w), lambda i: (i, 0, 0)),
            ),
            compiler_params=pltpu.CompilerParams(
                dimension_semantics=("parallel",),  # plane blocks are independent
                vmem_limit_bytes=int(vmem_limit),
            ),
        )

    try:
        out = jax.block_until_ready(_call(True)(xpp, A, B))
    except Exception:
        # This jax build rejects Buffered(1) for resident operands -> default buffering.
        out = jax.block_until_ready(_call(False)(xpp, A, B))

    return out[:P].reshape(N, C, out_h, out_w)


def downsample_ref(x, kernel, factor=2):
    """Pure-JAX reference (depthwise strided correlation with flipped kernel)."""
    k2d = jnp.asarray(make_kernel(kernel), dtype=jnp.float32)
    p = k2d.shape[0] - factor
    pad0, pad1 = (p + 1) // 2, p // 2
    N, C, H, W = x.shape
    xpad = jnp.pad(x.astype(jnp.float32),
                   ((0, 0), (0, 0), (pad0, pad1), (pad0, pad1)))
    w = jnp.flip(k2d, (0, 1))[None, None]          # (1, 1, kh, kw)
    w = jnp.tile(w, (C, 1, 1, 1))                  # depthwise
    out = lax.conv_general_dilated(
        xpad, w, window_strides=(factor, factor), padding='VALID',
        dimension_numbers=('NCHW', 'OIHW', 'NCHW'),
        feature_group_count=C, precision=lax.Precision.HIGHEST)
    return out.astype(x.dtype)


if __name__ == "__main__":
    key = jax.random.PRNGKey(0)
    x = jax.random.normal(key, (2, 4, 16, 16), dtype=jnp.float32)
    fir = [1.0, 3.0, 3.0, 1.0]      # standard StyleGAN2 blur kernel
    factor = 2

    out = downsample(x, fir, factor)
    jax.block_until_ready(out)

    ref = downsample_ref(x, fir, factor)
    assert out.shape == (2, 4, 8, 8) and out.dtype == x.dtype
    # Kernel uses DEFAULT MXU precision (per perf review) vs. a HIGHEST-precision conv
    # reference; tolerance sized for single-bf16-pass matmul rounding.
    err = float(jnp.max(jnp.abs(out - ref)))
    assert jnp.allclose(out, ref, atol=2e-2, rtol=2e-2), err
    print("KERNEL_OK")
</pallas_src>

<mosaic_0001>
module attributes {stable_mosaic.version = 11 : i64} {
  func.func @_downsample_kernel(%arg0: i32, %arg1: memref<4x16x16xf32, #tpu.memory_space<vmem>>, %arg2: memref<1x8x16xf32, #tpu.memory_space<vmem>>, %arg3: memref<1x16x8xf32, #tpu.memory_space<vmem>>, %arg4: memref<4x8x8xf32, #tpu.memory_space<vmem>>) attributes {dimension_semantics = [#tpu.dimension_semantics<parallel>], iteration_bounds = array<i64: 2>, scalar_prefetch = 0 : i64, scratch_operands = 0 : i64, tpu.core_type = #tpu.core_type<tc>, window_params = [{transform_indices = @transform_0, window_bounds = array<i64: 4, 16, 16>}, {pipeline_mode = #tpu.pipeline_mode<synchronous>, transform_indices = @transform_1, window_bounds = array<i64: 1, 8, 16>}, {pipeline_mode = #tpu.pipeline_mode<synchronous>, transform_indices = @transform_2, window_bounds = array<i64: 1, 16, 8>}, {transform_indices = @transform_3, window_bounds = array<i64: 4, 8, 8>}]} {
    %c0 = arith.constant 0 : index
    %c0_0 = arith.constant 0 : index
    %c0_1 = arith.constant 0 : index
    %0 = vector.load %arg1[%c0, %c0_0, %c0_1] : memref<4x16x16xf32, #tpu.memory_space<vmem>>, vector<4x16x16xf32>
    %1 = vector.shape_cast %0 : vector<4x16x16xf32> to vector<64x16xf32>
    %cst = arith.constant 0.000000e+00 : f32
    %2 = vector.broadcast %cst : f32 to vector<4x8x8xf32>
    %c0_2 = arith.constant 0 : index
    %c0_3 = arith.constant 0 : index
    %c0_4 = arith.constant 0 : index
    %3 = vector.load %arg3[%c0_2, %c0_3, %c0_4] : memref<1x16x8xf32, #tpu.memory_space<vmem>>, vector<1x16x8xf32>
    %4 = vector.shape_cast %3 : vector<1x16x8xf32> to vector<16x8xf32>
    %cst_5 = arith.constant dense<0.000000e+00> : vector<64x8xf32>
    %5 = tpu.matmul %1, %4, %cst_5 {dimension_numbers = #tpu.dot_dimension_numbers<[1], [0], [0], [1], [0, 0, 1, 1], [], []>} : vector<64x16xf32>, vector<16x8xf32>, vector<64x8xf32> -> vector<64x8xf32>
    %6 = vector.shape_cast %5 : vector<64x8xf32> to vector<4x16x8xf32>
    %c0_6 = arith.constant 0 : index
    %c0_7 = arith.constant 0 : index
    %c0_8 = arith.constant 0 : index
    %7 = vector.load %arg2[%c0_6, %c0_7, %c0_8] : memref<1x8x16xf32, #tpu.memory_space<vmem>>, vector<1x8x16xf32>
    %8 = vector.shape_cast %7 : vector<1x8x16xf32> to vector<8x16xf32>
    %9 = vector.shape_cast %8 : vector<8x16xf32> to vector<1x8x16xf32>
    %10 = vector.shape_cast %9 : vector<1x8x16xf32> to vector<1x8x16xf32>
    %11 = vector.broadcast %10 : vector<1x8x16xf32> to vector<4x8x16xf32>
    %cst_9 = arith.constant dense<0.000000e+00> : vector<4x8x8xf32>
    %12 = tpu.matmul %11, %6, %cst_9 {dimension_numbers = #tpu.dot_dimension_numbers<[2], [1], [1], [2], [0, 0, 0, 1, 1, 2], [0], [0]>} : vector<4x8x16xf32>, vector<4x16x8xf32>, vector<4x8x8xf32> -> vector<4x8x8xf32>
    %13 = arith.addf %2, %12 : vector<4x8x8xf32>
    %c0_10 = arith.constant 0 : index
    %c0_11 = arith.constant 0 : index
    %c0_12 = arith.constant 0 : index
    %14 = vector.load %arg4[%c0_10, %c0_11, %c0_12] : memref<4x8x8xf32, #tpu.memory_space<vmem>>, vector<4x8x8xf32>
    tpu.vector_store %arg4[%c0_10, %c0_11, %c0_12], %13 {strides = array<i32>} : memref<4x8x8xf32, #tpu.memory_space<vmem>>, vector<4x8x8xf32>,
    return
  }
  func.func @transform_0(%arg0: i32) -> (i32, i32, i32) {
    %c0_i32 = arith.constant 0 : i32
    %c0_i32_0 = arith.constant 0 : i32
    %c0_i32_1 = arith.constant 0 : i32
    return %arg0, %c0_i32, %c0_i32_0 : i32, i32, i32
  }
  func.func @transform_1(%arg0: i32) -> (i32, i32, i32) {
    %c0_i32 = arith.constant 0 : i32
    %c0_i32_0 = arith.constant 0 : i32
    %c0_i32_1 = arith.constant 0 : i32
    %c0_i32_2 = arith.constant 0 : i32
    return %c0_i32, %c0_i32_0, %c0_i32_1 : i32, i32, i32
  }
  func.func @transform_2(%arg0: i32) -> (i32, i32, i32) {
    %c0_i32 = arith.constant 0 : i32
    %c0_i32_0 = arith.constant 0 : i32
    %c0_i32_1 = arith.constant 0 : i32
    %c0_i32_2 = arith.constant 0 : i32
    return %c0_i32, %c0_i32_0, %c0_i32_1 : i32, i32, i32
  }
  func.func @transform_3(%arg0: i32) -> (i32, i32, i32) {
    %c0_i32 = arith.constant 0 : i32
    %c0_i32_0 = arith.constant 0 : i32
    %c0_i32_1 = arith.constant 0 : i32
    return %arg0, %c0_i32, %c0_i32_0 : i32, i32, i32
  }
}

module attributes {stable_mosaic.version = 11 : i64} {
  func.func @_downsample_kernel(%arg0: i32, %arg1: memref<4x16x16xf32, #tpu.memory_space<vmem>>, %arg2: memref<1x8x16xf32, #tpu.memory_space<vmem>>, %arg3: memref<1x16x8xf32, #tpu.memory_space<vmem>>, %arg4: memref<4x8x8xf32, #tpu.memory_space<vmem>>) attributes {dimension_semantics = [#tpu.dimension_semantics<parallel>], iteration_bounds = array<i64: 2>, scalar_prefetch = 0 : i64, scratch_operands = 0 : i64, tpu.core_type = #tpu.core_type<tc>, window_params = [{transform_indices = @transform_0, window_bounds = array<i64: 4, 16, 16>}, {pipeline_mode = #tpu.pipeline_mode<synchronous>, transform_indices = @transform_1, window_bounds = array<i64: 1, 8, 16>}, {pipeline_mode = #tpu.pipeline_mode<synchronous>, transform_indices = @transform_2, window_bounds = array<i64: 1, 16, 8>}, {transform_indices = @transform_3, window_bounds = array<i64: 4, 8, 8>}]} {
    %c0 = arith.constant 0 : index
    %c0_0 = arith.constant 0 : index
    %c0_1 = arith.constant 0 : index
    %0 = vector.load %arg1[%c0, %c0_0, %c0_1] : memref<4x16x16xf32, #tpu.memory_space<vmem>>, vector<4x16x16xf32>
    %1 = vector.shape_cast %0 : vector<4x16x16xf32> to vector<64x16xf32>
    %cst = arith.constant 0.000000e+00 : f32
    %2 = vector.broadcast %cst : f32 to vector<4x8x8xf32>
    %c0_2 = arith.constant 0 : index
    %c0_3 = arith.constant 0 : index
    %c0_4 = arith.constant 0 : index
    %3 = vector.load %arg3[%c0_2, %c0_3, %c0_4] : memref<1x16x8xf32, #tpu.memory_space<vmem>>, vector<1x16x8xf32>
    %4 = vector.shape_cast %3 : vector<1x16x8xf32> to vector<16x8xf32>
    %cst_5 = arith.constant dense<0.000000e+00> : vector<64x8xf32>
    %5 = tpu.matmul %1, %4, %cst_5 {dimension_numbers = #tpu.dot_dimension_numbers<[1], [0], [0], [1], [0, 0, 1, 1], [], []>} : vector<64x16xf32>, vector<16x8xf32>, vector<64x8xf32> -> vector<64x8xf32>
    %6 = vector.shape_cast %5 : vector<64x8xf32> to vector<4x16x8xf32>
    %c0_6 = arith.constant 0 : index
    %c0_7 = arith.constant 0 : index
    %c0_8 = arith.constant 0 : index
    %7 = vector.load %arg2[%c0_6, %c0_7, %c0_8] : memref<1x8x16xf32, #tpu.memory_space<vmem>>, vector<1x8x16xf32>
    %8 = vector.shape_cast %7 : vector<1x8x16xf32> to vector<8x16xf32>
    %9 = vector.shape_cast %8 : vector<8x16xf32> to vector<1x8x16xf32>
    %10 = vector.shape_cast %9 : vector<1x8x16xf32> to vector<1x8x16xf32>
    %11 = vector.broadcast %10 : vector<1x8x16xf32> to vector<4x8x16xf32>
    %cst_9 = arith.constant dense<0.000000e+00> : vector<4x8x8xf32>
    %12 = tpu.matmul %11, %6, %cst_9 {dimension_numbers = #tpu.dot_dimension_numbers<[2], [1], [1], [2], [0, 0, 0, 1, 1, 2], [0], [0]>} : vector<4x8x16xf32>, vector<4x16x8xf32>, vector<4x8x8xf32> -> vector<4x8x8xf32>
    %13 = arith.addf %2, %12 : vector<4x8x8xf32>
    %c0_10 = arith.constant 0 : index
    %c0_11 = arith.constant 0 : index
    %c0_12 = arith.constant 0 : index
    %14 = vector.load %arg4[%c0_10, %c0_11, %c0_12] : memref<4x8x8xf32, #tpu.memory_space<vmem>>, vector<4x8x8xf32>
    tpu.vector_store %arg4[%c0_10, %c0_11, %c0_12], %13 {strides = array<i32>} : memref<4x8x8xf32, #tpu.memory_space<vmem>>, vector<4x8x8xf32>,
    return
  }
  func.func @transform_0(%arg0: i32) -> (i32, i32, i32) {
    %c0_i32 = arith.constant 0 : i32
    %c0_i32_0 = arith.constant 0 : i32
    %c0_i32_1 = arith.constant 0 : i32
    return %arg0, %c0_i32, %c0_i32_0 : i32, i32, i32
  }
  func.func @transform_1(%arg0: i32) -> (i32, i32, i32) {
    %c0_i32 = arith.constant 0 : i32
    %c0_i32_0 = arith.constant 0 : i32
    %c0_i32_1 = arith.constant 0 : i32
    %c0_i32_2 = arith.constant 0 : i32
    return %c0_i32, %c0_i32_0, %c0_i32_1 : i32, i32, i32
  }
  func.func @transform_2(%arg0: i32) -> (i32, i32, i32) {
    %c0_i32 = arith.constant 0 : i32
    %c0_i32_0 = arith.constant 0 : i32
    %c0_i32_1 = arith.constant 0 : i32
    %c0_i32_2 = arith.constant 0 : i32
    return %c0_i32, %c0_i32_0, %c0_i32_1 : i32, i32, i32
  }
  func.func @transform_3(%arg0: i32) -> (i32, i32, i32) {
    %c0_i32 = arith.constant 0 : i32
    %c0_i32_0 = arith.constant 0 : i32
    %c0_i32_1 = arith.constant 0 : i32
    return %arg0, %c0_i32, %c0_i32_0 : i32, i32, i32
  }
}

</mosaic_0001>

<bundles_post_ra>
// kernel: tpu_custom_call.1
= control target key start
LH: loop header
LB: loop body
LE: loop exit
PB: predicated region body
PF: predicated region fallthrough
CT: control target
= control target key end

     0   :  { %8 = vsyncpa [#allocation3], 0  ;;  %s1162_s0 = inlined_call_operand.hbm [shape: f32[8,16,16], index: 0, kind: input, shape index: {}]   ;;  %s1163_s1 = inlined_call_operand.vmem [shape: f32[1,8,16], index: 1, kind: input, shape index: {}]   ;;  %s1164_s2 = inlined_call_operand.vmem [shape: f32[1,16,8], index: 2, kind: input, shape index: {}]   ;;  %s1165_s3 = inlined_call_operand.hbm [shape: f32[8,8,8], index: 3, kind: output, shape index: {}]  }
   0x1   :  { %10 = vsyncpa [#allocation3 + $0x1], 0 }
   0x2   :  { %11 = vsyncpa [#allocation4], 0 }
   0x3   :  { %13 = vsyncpa [#allocation4 + $0x1], 0  ;;  %s978_s12 = smov 0   ;;  %s980_s13 = smov 0  }
   0x4   :  { %s982_s14 = smov 0   ;;  %s984_s15 = smov 0  }
   0x5 LB: > { %s999_s16 = sadd.s32 4294967295, %s948_s15   ;;  %s708_s17 = sadd.s32 4294967294, %s948_s15   ;;  %s948_s15 = sphi %s984_s15, %s1180_s15   ;;  %s944_s14 = sphi %s982_s14, %s1179_s14   ;;  %s940_s13 = sphi %s980_s13, %s1178_s13   ;;  %s936_s12 = sphi %s978_s12, %s1177_s12  }
   0x6   : > { %s1003_s18 = sadd.s32 1, %s948_s15   ;;  %s26_s19 = sadd.s32 1, %s944_s14 }
   0x7   : > { %s23_s20 = ssub.s32 %s948_s15, %s1003_s18  ;;  %p33_p0 = scmp.ne.s32.totalorder %s944_s14, %s940_s13 }
   0x8   : > { %p24_p1 = scmp.eq.s32.totalorder %s23_s20, 0  ;;  %p34_p2 = scmp.eq.s32.totalorder %s948_s15, 0 }
   0x9   : > { %p39_p3 = scmp.ne.s32.totalorder %s940_s13, %s936_s12  ;;  %p40_p4 = scmp.eq.s32.totalorder %s999_s16, 0 }
   0xa   : > { %s1015_s21 = scalar_select %p24_p1, %s944_s14, %s26_s19  }
   0xb   : > { %p1017_p5 = por %p34_p2, %p33_p0  ;;  %p1021_p6 = por %p40_p4, %p39_p3 }
   0xc   : > { %p105_p7 = scmp.eq.s32.totalorder %s999_s16, 1  ;;  %p111_p8 = scmp.eq.s32.totalorder %s708_s17, 1 }
   0xd   : > { %s1169_s23 = scalar_select %p1021_p6, 1, 0 }
   0xe   : > { %p816_p10 = scmp.lt.s32.totalorder %s948_s15, 2  ;;  %p1028_p11 = por %p105_p7, %p33_p0 }
   0xf   : > { %p1032_p12 = por %p111_p8, %p39_p3  ;;  %s137_s26 = sand.u32 1, %s944_s14  }
  0x10   : > { %s1170_s24 = scalar_select %p1028_p11, 1, 0 }
  0x11   : > { %s1171_s25 = scalar_select %p1032_p12, 1, 0 }
  0x12   : > { %s736_s27 = sshll.u32 %s948_s15, 10  ;;  %s711_s28 = sshll.u32 %s137_s26, 6 }
  0x13   : > { %s1041_s4 = scalar_lea.hbm %s1162_s0, %s736_s27  ;;  %s141_s5 = scalar_lea.vmem [#allocation2], %s711_s28 }
  0x14   : > { %s149_s6 = sshll.u32 %s141_s5, 4  ;;  %p1045_p13 = pnand %p816_p10, %p1017_p5  ;;  %s1049_s6 = int_to_ptr.vmem [resolvable:$true] %s149_s6 }
  0x15   : > { %s1051_s8 = scalar_lea.sflag [#allocation3], %s137_s26  ;;  %s856_s9 = scalar_lea.hbm %s1041_s4, 1024 }
  0x16   : > { %p857_p0 = scmp.ne.s32.totalorder %s1041_s4, %s856_s9  ;;  %p858_p1 = pneg %p1045_p13 }
  0x17   : > { %s861_s17 = scalar_lea.hbm %s1162_s0, 2048  ;;  %p862_p4 = scmp.lt.s32.totalorder %s1041_s4, %s1162_s0 }
  0x18   : > { %p859_p2 = pnand %p858_p1, %p857_p0  ;;  %p863_p5 = scmp.lt.s32.totalorder %s861_s17, %s856_s9 }
  0x1a   : > { %p860_p3 = pneg %p859_p2  ;;  %p864_p7 = por %p863_p5, %p862_p4 }
  0x1c   : > { %p865_p8 = pnand %p864_p7, %p860_p3 }
  0x1e   : > { %868 = shalt.err (!%p865_p8)
}
  0x1f   : > { %s869_s22 = scalar_lea.vmem %s1049_s6, 1024  ;;  %s950_s26 = smov [#allocation2]  }
  0x20   : > { %p870_p10 = scmp.ne.s32.totalorder %s1049_s6, %s869_s22  ;;  %s874_s27 = sshll.u32 %s950_s26, 4  ;;  %s875_s27 = int_to_ptr.vmem [resolvable:$false] %s874_s27 }
  0x21   : > { %s876_s28 = scalar_lea.vmem %s875_s27, 2048  ;;  %p877_p2 = scmp.lt.s32.totalorder %s1049_s6, %s875_s27 }
  0x22   : > { %p872_p9 = pnand %p870_p10, %p858_p1  ;;  %p878_p12 = scmp.lt.s32.totalorder %s876_s28, %s869_s22 }
  0x24   : > { %p873_p0 = pneg %p872_p9  ;;  %p879_p11 = por %p878_p12, %p877_p2 }
  0x26   : > { %p880_p6 = pnand %p879_p11, %p873_p0 }
  0x28   : > { %883 = shalt.err (!%p880_p6)
}
  0x29   : > { %s951_s29 = smov 128   ;;  %s952_s30 = smov 8  }
  0x2a   : > { %811 = dma.hbm_to_vmem [thread:$0]  (!%p1045_p13), %s1041_s4, 1024, %s1049_s6, %s1051_s8, %s951_s29, %s951_s29, %s952_s30  }
  0x2b   : > { %p715_p9 = scmp.ge.s32.totalorder %s948_s15, 1  ;;  %p157_p1 = scmp.lt.s32.totalorder %s948_s15, 3 }
  0x2d   : > { %p158_p3 = pnand %p715_p9, %p157_p1 }
  0x2e   : > { %s1075_s5 = sand.u32 (!%p158_p3), 1, %s940_s13   ;;  %p1173_p6 = scmp.ne.s32.totalorder (!%p158_p3), %s1169_s23, 0 }
  0x2f   : > { %161 = sbr.rel (%p158_p3) target bundleno = 474 (0x1da), region = 32  ;;  %s716_s9 = sshll.u32 (!%p158_p3), %s1075_s5, 6 }
  0x30   : > { %s164_s10 = scalar_lea.sflag (!%p158_p3), [#allocation3], %s1075_s5  ;;  %s167_s11 = scalar_lea.vmem (!%p158_p3), [#allocation2], %s716_s9 }
  0x34   : > { %927 = dma.done.wait (%p1173_p6), %s164_s10, 1024  }
  0x35   : > { %929 = vsyncadd (%p1173_p6), %s164_s10, 4294966272  ;;  %vm202_vm0 = vcmask 130048   ;;  %v201_v0 = vld [vmem:[%s1164_s2 + $0x8] sm:$0xff]  ;;  %v200_v1 = vld [vmem:[%s1164_s2] sm:$0xff]  ;;  %v953_v10 = vmov 0.0   ;;  %vm954_vm1 = vmmov 0  }
  0x36   : > { %v192_v2 = vld [vmem:[%s167_s11] sm:$0xff]  ;;  %760 = vmatprep.subr.mxu0 %v201_v0  ;;  %v193_v3 = vld [vmem:[%s167_s11 + $0x8] sm:$0xff]  ;;  %v194_v4 = vld [vmem:[%s167_s11 + $0x10] sm:$0xff]  ;;  %776 = vmatprep.subr.mxu1 %v953_v10  ;;  %s717_s19 = sshll.u32 %s1075_s5, 5  ;;  %vm616_vm2 = vcmask 64512   ;;  %s737_s26 = sshll.u32 %s999_s16, 9 }
  0x37   : > { %764 = vmatprep.mubr.msk.f32.mxu0 %vm202_vm0, %v192_v2  ;;  %761 = vmatpush3.msra.mxu0 %v201_v0  ;;  %v195_v5 = vld [vmem:[%s167_s11 + $0x18] sm:$0xff]  ;;  %v196_v6 = vld [vmem:[%s167_s11 + $0x20] sm:$0xff]  ;;  %v197_v7 = vld [vmem:[%s167_s11 + $0x28] sm:$0xff]  ;;  %s189_s20 = scalar_lea.vmem [#allocation5], %s717_s19  ;;  %s1118_s29 = scalar_lea.hbm %s1165_s3, %s737_s26 }
  0x38   : > { %762 = vmatprep.subr.mxu0 %v200_v1  ;;  %v198_v8 = vld [vmem:[%s167_s11 + $0x30] sm:$0xff]  ;;  %v199_v9 = vld [vmem:[%s167_s11 + $0x38] sm:$0xff]  ;;  %780 = vmatprep.mubr.msk.f32.mxu1 %vm954_vm1, %v953_v10  ;;  %v332_v12 = vld [vmem:[%s1163_s1] sm:$0xff]  ;;  %s635_s22 = sshll.u32 %s189_s20, 4  ;;  %s622_s30 = scalar_lea.sflag [#allocation4], %s1075_s5  ;;  %s1112_s22 = int_to_ptr.vmem [resolvable:$true] %s635_s22 }
  0x39   : > { %763 = vmatpush3.msra.mxu0 %v200_v1  ;;  %s884_s16 = scalar_lea.vmem %s1112_s22, 512  ;;  %p1174_p12 = scmp.ne.s32.totalorder %s1170_s24, 0 }
  0x3a   : > { %765 = vmatmul.mubr.msk.f32.vlgmr.msra.gmra.mxu0 %vm202_vm0, %v193_v3  ;;  %p885_p11 = scmp.ne.s32.totalorder %s1112_s22, %s884_s16  ;;  %s955_s9 = smov [#allocation5]  }
  0x3b   : > { %767 = vmatprep.mubr.msk.f32.mxu0 %vm202_vm0, %v194_v4  ;;  %s888_s10 = sshll.u32 %s955_s9, 4  ;;  %s889_s10 = int_to_ptr.vmem [resolvable:$false] %s888_s10 }
  0x3c   : > { %p886_p13 = pnand %p885_p11, %p1174_p12  ;;  %s890_s11 = scalar_lea.vmem %s889_s10, 1024 }
  0x3d   : > { %p891_p5 = scmp.lt.s32.totalorder %s1112_s22, %s889_s10  ;;  %p892_p7 = scmp.lt.s32.totalorder %s890_s11, %s884_s16 }
  0x3e   : > { %768 = vmatmul.mubr.msk.f32.gmra.mxu0 %vm202_vm0, %v195_v5  ;;  %p887_p4 = pneg %p886_p13 }
  0x3f   : > { %770 = vmatprep.mubr.msk.f32.mxu0 %vm202_vm0, %v196_v6  ;;  %p893_p8 = por %p892_p7, %p891_p5 }
  0x41   : > { %p894_p10 = pnand %p893_p8, %p887_p4 }
  0x42   : > { %771 = vmatmul.mubr.msk.f32.gmra.mxu0 %vm202_vm0, %v197_v7 }
  0x43   : > { %773 = vmatprep.mubr.msk.f32.mxu0 %vm202_vm0, %v198_v8 }
  0x46   : > { %774 = vmatmul.mubr.msk.f32.gmra.mxu0 %vm202_vm0, %v199_v9 }
  0xfa   : > { %v766_v11 = vpop.f32.mrf.mxu0 }
  0xfb   : > { %777 = vmatpush3.msra.mxu1 %v766_v11 }
  0xfc   : > { %v293_v13 = vpop.f32.mrf.mxu0  ;;  %778 = vmatprep.subr.mxu1 %v953_v10 }
  0xfd   : > { %779 = vmatpush3.msra.mxu1 %v293_v13 }
  0xfe   : > { %v769_v14 = vpop.f32.mrf.mxu0  ;;  %781 = vmatmul.mubr.msk.f32.vlgmr.msra.gmra.mxu1 %vm202_vm0, %v332_v12  ;;  %783 = vmatprep.subr.mxu1 %v953_v10 }
  0xff   : > { %784 = vmatpush3.msra.mxu1 %v769_v14  ;;  %787 = vmatprep.mubr.msk.f32.mxu1 %vm954_vm1, %v953_v10 }
 0x100   : > { %v303_v15 = vpop.f32.mrf.mxu0  ;;  %785 = vmatprep.subr.mxu1 %v953_v10 }
 0x101   : > { %786 = vmatpush3.msra.mxu1 %v303_v15 }
 0x102   : > { %v772_v16 = vpop.f32.mrf.mxu0  ;;  %788 = vmatmul.mubr.msk.f32.vlgmr.msra.gmra.mxu1 %vm202_vm0, %v332_v12  ;;  %790 = vmatprep.subr.mxu1 %v953_v10 }
 0x103   : > { %791 = vmatpush3.msra.mxu1 %v772_v16  ;;  %794 = vmatprep.mubr.msk.f32.mxu1 %vm954_vm1, %v953_v10 }
 0x104   : > { %v313_v17 = vpop.f32.mrf.mxu0  ;;  %792 = vmatprep.subr.mxu1 %v953_v10 }
 0x105   : > { %793 = vmatpush3.msra.mxu1 %v313_v17 }
 0x106   : > { %v775_v18 = vpop.f32.mrf.mxu0  ;;  %795 = vmatmul.mubr.msk.f32.vlgmr.msra.gmra.mxu1 %vm202_vm0, %v332_v12  ;;  %797 = vmatprep.subr.mxu1 %v953_v10 }
 0x107   : > { %798 = vmatpush3.msra.mxu1 %v775_v18  ;;  %801 = vmatprep.mubr.msk.f32.mxu1 %vm954_vm1, %v953_v10 }
 0x108   : > { %v323_v19 = vpop.f32.mrf.mxu0  ;;  %799 = vmatprep.subr.mxu1 %v953_v10 }
 0x109   : > { %800 = vmatpush3.msra.mxu1 %v323_v19 }
 0x10a   : > { %802 = vmatmul.mubr.msk.f32.vlgmr.msra.gmra.mxu1 %vm202_vm0, %v332_v12 }
 0x1be   : > { %v402_v20 = vpop.f32.mrf.mxu1 }
 0x1bf   : > { %617 = vst.msk [vmem:[%s189_s20] sm:$0xff] %vm616_vm2, %v402_v20 }
 0x1c0   : > { %v782_v21 = vpop.f32.mrf.mxu1 }
 0x1c2   : > { %v472_v22 = vpop.f32.mrf.mxu1 }
 0x1c3   : > { %618 = vst.msk [vmem:[%s189_s20 + $0x8] sm:$0xff] %vm616_vm2, %v472_v22 }
 0x1c4   : > { %v789_v23 = vpop.f32.mrf.mxu1 }
 0x1c6   : > { %v542_v24 = vpop.f32.mrf.mxu1 }
 0x1c7   : > { %619 = vst.msk [vmem:[%s189_s20 + $0x10] sm:$0xff] %vm616_vm2, %v542_v24 }
 0x1c8   : > { %v796_v25 = vpop.f32.mrf.mxu1 }
 0x1ca   : > { %v612_v26 = vpop.f32.mrf.mxu1 }
 0x1cb   : > { %620 = vst.msk [vmem:[%s189_s20 + $0x18] sm:$0xff] %vm616_vm2, %v612_v26 }
 0x1cc   : > { %v803_v27 = vpop.f32.mrf.mxu1 }
 0x1cd   : > { %897 = shalt.err (!%p894_p10)
}
 0x1ce   : > { %s898_s4 = scalar_lea.hbm %s1118_s29, 512  ;;  %s902_s8 = scalar_lea.hbm %s1165_s3, 1024 }
 0x1cf   : > { %p899_p0 = scmp.ne.s32.totalorder %s1118_s29, %s898_s4  ;;  %p903_p1 = scmp.lt.s32.totalorder %s1118_s29, %s1165_s3 }
 0x1d0   : > { %p904_p3 = scmp.lt.s32.totalorder %s902_s8, %s898_s4 }
 0x1d1   : > { %p900_p2 = pnand %p899_p0, %p1174_p12 }
 0x1d2   : > { %p905_p6 = por %p904_p3, %p903_p1 }
 0x1d3   : > { %p901_p9 = pneg %p900_p2 }
 0x1d5   : > { %p906_p11 = pnand %p905_p6, %p901_p9 }
 0x1d7   : > { %909 = shalt.err (!%p906_p11)
}
 0x1d8   : > { %s956_s19 = smov 128   ;;  %s957_s20 = smov 8  }
 0x1d9   : > { %806 = dma.vmem_to_hbm [thread:$0]  (%p1174_p12), %s1112_s22, 512, %s1118_s29, %s622_s30, %s956_s19, %s956_s19, %s957_s20  }
 0x1da PF: > { %s650_s26 = sand.u32 1, %s936_s12   ;;  %p1175_p13 = scmp.ne.s32.totalorder %s1171_s25, 0 }
 0x1db   : > { %p1176_p4 = scmp.ge.s32.totalorder %s948_s15, 2  ;;  %s651_s27 = scalar_lea.sflag [#allocation4], %s650_s26 }
 0x1dd   : > { %p813_p5 = pnand %p1176_p4, %p1175_p13 }
 0x1df   : > { %p814_p7 = pneg %p813_p5 }
 0x1e1   : > { %931 = dma.done.wait (%p814_p7), %s651_s27, 512  }
 0x1e2   : > { %933 = vsyncadd (%p814_p7), %s651_s27, 4294966784  ;;  %p16_p8 = scmp.ge.s32.totalorder %s1003_s18, 4   ;;  %s1177_s12 = smov %s940_s13 }
 0x1e3   : > { %s1178_s13 = smov %s944_s14  ;;  %s1179_s14 = smov %s1015_s21 }
 0x1e4   : > { %s1180_s15 = smov %s1003_s18  ;;  %18 = sbr.rel (!%p16_p8) target bundleno = 5 (0x5), region = 77 }
 0x1e9   :  { %656 = vsyncpa [#allocation3], 1 }
 0x1ea   :  { %658 = vsyncpa [#allocation3 + $0x1], 1 }
 0x1eb   :  { %659 = vsyncpa [#allocation4], 1 }
 0x1ec   :  { %661 = vsyncpa [#allocation4 + $0x1], 1 }

// kernel: tpu_custom_call.1
= control target key start
LH: loop header
LB: loop body
LE: loop exit
PB: predicated region body
PF: predicated region fallthrough
CT: control target
= control target key end

     0   :  { %8 = vsyncpa [#allocation3], 0  ;;  %s1162_s0 = inlined_call_operand.hbm [shape: f32[8,16,16], index: 0, kind: input, shape index: {}]   ;;  %s1163_s1 = inlined_call_operand.vmem [shape: f32[1,8,16], index: 1, kind: input, shape index: {}]   ;;  %s1164_s2 = inlined_call_operand.vmem [shape: f32[1,16,8], index: 2, kind: input, shape index: {}]   ;;  %s1165_s3 = inlined_call_operand.hbm [shape: f32[8,8,8], index: 3, kind: output, shape index: {}]  }
   0x1   :  { %10 = vsyncpa [#allocation3 + $0x1], 0 }
   0x2   :  { %11 = vsyncpa [#allocation4], 0 }
   0x3   :  { %13 = vsyncpa [#allocation4 + $0x1], 0  ;;  %s978_s12 = smov 0   ;;  %s980_s13 = smov 0  }
   0x4   :  { %s982_s14 = smov 0   ;;  %s984_s15 = smov 0  }
   0x5 LB: > { %s999_s16 = sadd.s32 4294967295, %s948_s15   ;;  %s708_s17 = sadd.s32 4294967294, %s948_s15   ;;  %s948_s15 = sphi %s984_s15, %s1180_s15   ;;  %s944_s14 = sphi %s982_s14, %s1179_s14   ;;  %s940_s13 = sphi %s980_s13, %s1178_s13   ;;  %s936_s12 = sphi %s978_s12, %s1177_s12  }
   0x6   : > { %s1003_s18 = sadd.s32 1, %s948_s15   ;;  %s26_s19 = sadd.s32 1, %s944_s14 }
   0x7   : > { %s23_s20 = ssub.s32 %s948_s15, %s1003_s18  ;;  %p33_p0 = scmp.ne.s32.totalorder %s944_s14, %s940_s13 }
   0x8   : > { %p24_p1 = scmp.eq.s32.totalorder %s23_s20, 0  ;;  %p34_p2 = scmp.eq.s32.totalorder %s948_s15, 0 }
   0x9   : > { %p39_p3 = scmp.ne.s32.totalorder %s940_s13, %s936_s12  ;;  %p40_p4 = scmp.eq.s32.totalorder %s999_s16, 0 }
   0xa   : > { %s1015_s21 = scalar_select %p24_p1, %s944_s14, %s26_s19  }
   0xb   : > { %p1017_p5 = por %p34_p2, %p33_p0  ;;  %p1021_p6 = por %p40_p4, %p39_p3 }
   0xc   : > { %p105_p7 = scmp.eq.s32.totalorder %s999_s16, 1  ;;  %p111_p8 = scmp.eq.s32.totalorder %s708_s17, 1 }
   0xd   : > { %s1169_s23 = scalar_select %p1021_p6, 1, 0 }
   0xe   : > { %p816_p10 = scmp.lt.s32.totalorder %s948_s15, 2  ;;  %p1028_p11 = por %p105_p7, %p33_p0 }
   0xf   : > { %p1032_p12 = por %p111_p8, %p39_p3  ;;  %s137_s26 = sand.u32 1, %s944_s14  }
  0x10   : > { %s1170_s24 = scalar_select %p1028_p11, 1, 0 }
  0x11   : > { %s1171_s25 = scalar_select %p1032_p12, 1, 0 }
  0x12   : > { %s736_s27 = sshll.u32 %s948_s15, 10  ;;  %s711_s28 = sshll.u32 %s137_s26, 6 }
  0x13   : > { %s1041_s4 = scalar_lea.hbm %s1162_s0, %s736_s27  ;;  %s141_s5 = scalar_lea.vmem [#allocation2], %s711_s28 }
  0x14   : > { %s149_s6 = sshll.u32 %s141_s5, 4  ;;  %p1045_p13 = pnand %p816_p10, %p1017_p5  ;;  %s1049_s6 = int_to_ptr.vmem [resolvable:$true] %s149_s6 }
  0x15   : > { %s1051_s8 = scalar_lea.sflag [#allocation3], %s137_s26  ;;  %s856_s9 = scalar_lea.hbm %s1041_s4, 1024 }
  0x16   : > { %p857_p0 = scmp.ne.s32.totalorder %s1041_s4, %s856_s9  ;;  %p858_p1 = pneg %p1045_p13 }
  0x17   : > { %s861_s17 = scalar_lea.hbm %s1162_s0, 2048  ;;  %p862_p4 = scmp.lt.s32.totalorder %s1041_s4, %s1162_s0 }
  0x18   : > { %p859_p2 = pnand %p858_p1, %p857_p0  ;;  %p863_p5 = scmp.lt.s32.totalorder %s861_s17, %s856_s9 }
  0x1a   : > { %p860_p3 = pneg %p859_p2  ;;  %p864_p7 = por %p863_p5, %p862_p4 }
  0x1c   : > { %p865_p8 = pnand %p864_p7, %p860_p3 }
  0x1e   : > { %868 = shalt.err (!%p865_p8)
}
  0x1f   : > { %s869_s22 = scalar_lea.vmem %s1049_s6, 1024  ;;  %s950_s26 = smov [#allocation2]  }
  0x20   : > { %p870_p10 = scmp.ne.s32.totalorder %s1049_s6, %s869_s22  ;;  %s874_s27 = sshll.u32 %s950_s26, 4  ;;  %s875_s27 = int_to_ptr.vmem [resolvable:$false] %s874_s27 }
  0x21   : > { %s876_s28 = scalar_lea.vmem %s875_s27, 2048  ;;  %p877_p2 = scmp.lt.s32.totalorder %s1049_s6, %s875_s27 }
  0x22   : > { %p872_p9 = pnand %p870_p10, %p858_p1  ;;  %p878_p12 = scmp.lt.s32.totalorder %s876_s28, %s869_s22 }
  0x24   : > { %p873_p0 = pneg %p872_p9  ;;  %p879_p11 = por %p878_p12, %p877_p2 }
  0x26   : > { %p880_p6 = pnand %p879_p11, %p873_p0 }
  0x28   : > { %883 = shalt.err (!%p880_p6)
}
  0x29   : > { %s951_s29 = smov 128   ;;  %s952_s30 = smov 8  }
  0x2a   : > { %811 = dma.hbm_to_vmem [thread:$0]  (!%p1045_p13), %s1041_s4, 1024, %s1049_s6, %s1051_s8, %s951_s29, %s951_s29, %s952_s30  }
  0x2b   : > { %p715_p9 = scmp.ge.s32.totalorder %s948_s15, 1  ;;  %p157_p1 = scmp.lt.s32.totalorder %s948_s15, 3 }
  0x2d   : > { %p158_p3 = pnand %p715_p9, %p157_p1 }
  0x2e   : > { %s1075_s5 = sand.u32 (!%p158_p3), 1, %s940_s13   ;;  %p1173_p6 = scmp.ne.s32.totalorder (!%p158_p3), %s1169_s23, 0 }
  0x2f   : > { %161 = sbr.rel (%p158_p3) target bundleno = 474 (0x1da), region = 32  ;;  %s716_s9 = sshll.u32 (!%p158_p3), %s1075_s5, 6 }
  0x30   : > { %s164_s10 = scalar_lea.sflag (!%p158_p3), [#allocation3], %s1075_s5  ;;  %s167_s11 = scalar_lea.vmem (!%p158_p3), [#allocation2], %s716_s9 }
  0x34   : > { %927 = dma.done.wait (%p1173_p6), %s164_s10, 1024  }
  0x35   : > { %929 = vsyncadd (%p1173_p6), %s164_s10, 4294966272  ;;  %vm202_vm0 = vcmask 130048   ;;  %v201_v0 = vld [vmem:[%s1164_s2 + $0x8] sm:$0xff]  ;;  %v200_v1 = vld [vmem:[%s1164_s2] sm:$0xff]  ;;  %v953_v10 = vmov 0.0   ;;  %vm954_vm1 = vmmov 0  }
  0x36   : > { %v192_v2 = vld [vmem:[%s167_s11] sm:$0xff]  ;;  %760 = vmatprep.subr.mxu0 %v201_v0  ;;  %v193_v3 = vld [vmem:[%s167_s11 + $0x8] sm:$0xff]  ;;  %v194_v4 = vld [vmem:[%s167_s11 + $0x10] sm:$0xff]  ;;  %776 = vmatprep.subr.mxu1 %v953_v10  ;;  %s717_s19 = sshll.u32 %s1075_s5, 5  ;;  %vm616_vm2 = vcmask 64512   ;;  %s737_s26 = sshll.u32 %s999_s16, 9 }
  0x37   : > { %764 = vmatprep.mubr.msk.f32.mxu0 %vm202_vm0, %v192_v2  ;;  %761 = vmatpush3.msra.mxu0 %v201_v0  ;;  %v195_v5 = vld [vmem:[%s167_s11 + $0x18] sm:$0xff]  ;;  %v196_v6 = vld [vmem:[%s167_s11 + $0x20] sm:$0xff]  ;;  %v197_v7 = vld [vmem:[%s167_s11 + $0x28] sm:$0xff]  ;;  %s189_s20 = scalar_lea.vmem [#allocation5], %s717_s19  ;;  %s1118_s29 = scalar_lea.hbm %s1165_s3, %s737_s26 }
  0x38   : > { %762 = vmatprep.subr.mxu0 %v200_v1  ;;  %v198_v8 = vld [vmem:[%s167_s11 + $0x30] sm:$0xff]  ;;  %v199_v9 = vld [vmem:[%s167_s11 + $0x38] sm:$0xff]  ;;  %780 = vmatprep.mubr.msk.f32.mxu1 %vm954_vm1, %v953_v10  ;;  %v332_v12 = vld [vmem:[%s1163_s1] sm:$0xff]  ;;  %s635_s22 = sshll.u32 %s189_s20, 4  ;;  %s622_s30 = scalar_lea.sflag [#allocation4], %s1075_s5  ;;  %s1112_s22 = int_to_ptr.vmem [resolvable:$true] %s635_s22 }
  0x39   : > { %763 = vmatpush3.msra.mxu0 %v200_v1  ;;  %s884_s16 = scalar_lea.vmem %s1112_s22, 512  ;;  %p1174_p12 = scmp.ne.s32.totalorder %s1170_s24, 0 }
  0x3a   : > { %765 = vmatmul.mubr.msk.f32.vlgmr.msra.gmra.mxu0 %vm202_vm0, %v193_v3  ;;  %p885_p11 = scmp.ne.s32.totalorder %s1112_s22, %s884_s16  ;;  %s955_s9 = smov [#allocation5]  }
  0x3b   : > { %767 = vmatprep.mubr.msk.f32.mxu0 %vm202_vm0, %v194_v4  ;;  %s888_s10 = sshll.u32 %s955_s9, 4  ;;  %s889_s10 = int_to_ptr.vmem [resolvable:$false] %s888_s10 }
  0x3c   : > { %p886_p13 = pnand %p885_p11, %p1174_p12  ;;  %s890_s11 = scalar_lea.vmem %s889_s10, 1024 }
  0x3d   : > { %p891_p5 = scmp.lt.s32.totalorder %s1112_s22, %s889_s10  ;;  %p892_p7 = scmp.lt.s32.totalorder %s890_s11, %s884_s16 }
  0x3e   : > { %768 = vmatmul.mubr.msk.f32.gmra.mxu0 %vm202_vm0, %v195_v5  ;;  %p887_p4 = pneg %p886_p13 }
  0x3f   : > { %770 = vmatprep.mubr.msk.f32.mxu0 %vm202_vm0, %v196_v6  ;;  %p893_p8 = por %p892_p7, %p891_p5 }
  0x41   : > { %p894_p10 = pnand %p893_p8, %p887_p4 }
  0x42   : > { %771 = vmatmul.mubr.msk.f32.gmra.mxu0 %vm202_vm0, %v197_v7 }
  0x43   : > { %773 = vmatprep.mubr.msk.f32.mxu0 %vm202_vm0, %v198_v8 }
  0x46   : > { %774 = vmatmul.mubr.msk.f32.gmra.mxu0 %vm202_vm0, %v199_v9 }
  0xfa   : > { %v766_v11 = vpop.f32.mrf.mxu0 }
  0xfb   : > { %777 = vmatpush3.msra.mxu1 %v766_v11 }
  0xfc   : > { %v293_v13 = vpop.f32.mrf.mxu0  ;;  %778 = vmatprep.subr.mxu1 %v953_v10 }
  0xfd   : > { %779 = vmatpush3.msra.mxu1 %v293_v13 }
  0xfe   : > { %v769_v14 = vpop.f32.mrf.mxu0  ;;  %781 = vmatmul.mubr.msk.f32.vlgmr.msra.gmra.mxu1 %vm202_vm0, %v332_v12  ;;  %783 = vmatprep.subr.mxu1 %v953_v10 }
  0xff   : > { %784 = vmatpush3.msra.mxu1 %v769_v14  ;;  %787 = vmatprep.mubr.msk.f32.mxu1 %vm954_vm1, %v953_v10 }
 0x100   : > { %v303_v15 = vpop.f32.mrf.mxu0  ;;  %785 = vmatprep.subr.mxu1 %v953_v10 }
 0x101   : > { %786 = vmatpush3.msra.mxu1 %v303_v15 }
 0x102   : > { %v772_v16 = vpop.f32.mrf.mxu0  ;;  %788 = vmatmul.mubr.msk.f32.vlgmr.msra.gmra.mxu1 %vm202_vm0, %v332_v12  ;;  %790 = vmatprep.subr.mxu1 %v953_v10 }
 0x103   : > { %791 = vmatpush3.msra.mxu1 %v772_v16  ;;  %794 = vmatprep.mubr.msk.f32.mxu1 %vm954_vm1, %v953_v10 }
 0x104   : > { %v313_v17 = vpop.f32.mrf.mxu0  ;;  %792 = vmatprep.subr.mxu1 %v953_v10 }
 0x105   : > { %793 = vmatpush3.msra.mxu1 %v313_v17 }
 0x106   : > { %v775_v18 = vpop.f32.mrf.mxu0  ;;  %795 = vmatmul.mubr.msk.f32.vlgmr.msra.gmra.mxu1 %vm202_vm0, %v332_v12  ;;  %797 = vmatprep.subr.mxu1 %v953_v10 }
 0x107   : > { %798 = vmatpush3.msra.mxu1 %v775_v18  ;;  %801 = vmatprep.mubr.msk.f32.mxu1 %vm954_vm1, %v953_v10 }
 0x108   : > { %v323_v19 = vpop.f32.mrf.mxu0  ;;  %799 = vmatprep.subr.mxu1 %v953_v10 }
 0x109   : > { %800 = vmatpush3.msra.mxu1 %v323_v19 }
 0x10a   : > { %802 = vmatmul.mubr.msk.f32.vlgmr.msra.gmra.mxu1 %vm202_vm0, %v332_v12 }
 0x1be   : > { %v402_v20 = vpop.f32.mrf.mxu1 }
 0x1bf   : > { %617 = vst.msk [vmem:[%s189_s20] sm:$0xff] %vm616_vm2, %v402_v20 }
 0x1c0   : > { %v782_v21 = vpop.f32.mrf.mxu1 }
 0x1c2   : > { %v472_v22 = vpop.f32.mrf.mxu1 }
 0x1c3   : > { %618 = vst.msk [vmem:[%s189_s20 + $0x8] sm:$0xff] %vm616_vm2, %v472_v22 }
 0x1c4   : > { %v789_v23 = vpop.f32.mrf.mxu1 }
 0x1c6   : > { %v542_v24 = vpop.f32.mrf.mxu1 }
 0x1c7   : > { %619 = vst.msk [vmem:[%s189_s20 + $0x10] sm:$0xff] %vm616_vm2, %v542_v24 }
 0x1c8   : > { %v796_v25 = vpop.f32.mrf.mxu1 }
 0x1ca   : > { %v612_v26 = vpop.f32.mrf.mxu1 }
 0x1cb   : > { %620 = vst.msk [vmem:[%s189_s20 + $0x18] sm:$0xff] %vm616_vm2, %v612_v26 }
 0x1cc   : > { %v803_v27 = vpop.f32.mrf.mxu1 }
 0x1cd   : > { %897 = shalt.err (!%p894_p10)
}
 0x1ce   : > { %s898_s4 = scalar_lea.hbm %s1118_s29, 512  ;;  %s902_s8 = scalar_lea.hbm %s1165_s3, 1024 }
 0x1cf   : > { %p899_p0 = scmp.ne.s32.totalorder %s1118_s29, %s898_s4  ;;  %p903_p1 = scmp.lt.s32.totalorder %s1118_s29, %s1165_s3 }
 0x1d0   : > { %p904_p3 = scmp.lt.s32.totalorder %s902_s8, %s898_s4 }
 0x1d1   : > { %p900_p2 = pnand %p899_p0, %p1174_p12 }
 0x1d2   : > { %p905_p6 = por %p904_p3, %p903_p1 }
 0x1d3   : > { %p901_p9 = pneg %p900_p2 }
 0x1d5   : > { %p906_p11 = pnand %p905_p6, %p901_p9 }
 0x1d7   : > { %909 = shalt.err (!%p906_p11)
}
 0x1d8   : > { %s956_s19 = smov 128   ;;  %s957_s20 = smov 8  }
 0x1d9   : > { %806 = dma.vmem_to_hbm [thread:$0]  (%p1174_p12), %s1112_s22, 512, %s1118_s29, %s622_s30, %s956_s19, %s956_s19, %s957_s20  }
 0x1da PF: > { %s650_s26 = sand.u32 1, %s936_s12   ;;  %p1175_p13 = scmp.ne.s32.totalorder %s1171_s25, 0 }
 0x1db   : > { %p1176_p4 = scmp.ge.s32.totalorder %s948_s15, 2  ;;  %s651_s27 = scalar_lea.sflag [#allocation4], %s650_s26 }
 0x1dd   : > { %p813_p5 = pnand %p1176_p4, %p1175_p13 }
 0x1df   : > { %p814_p7 = pneg %p813_p5 }
 0x1e1   : > { %931 = dma.done.wait (%p814_p7), %s651_s27, 512  }
 0x1e2   : > { %933 = vsyncadd (%p814_p7), %s651_s27, 4294966784  ;;  %p16_p8 = scmp.ge.s32.totalorder %s1003_s18, 4   ;;  %s1177_s12 = smov %s940_s13 }
 0x1e3   : > { %s1178_s13 = smov %s944_s14  ;;  %s1179_s14 = smov %s1015_s21 }
 0x1e4   : > { %s1180_s15 = smov %s1003_s18  ;;  %18 = sbr.rel (!%p16_p8) target bundleno = 5 (0x5), region = 77 }
 0x1e9   :  { %656 = vsyncpa [#allocation3], 1 }
 0x1ea   :  { %658 = vsyncpa [#allocation3 + $0x1], 1 }
 0x1eb   :  { %659 = vsyncpa [#allocation4], 1 }
 0x1ec   :  { %661 = vsyncpa [#allocation4 + $0x1], 1 }

</bundles_post_ra>
